<compile_context>
chip_gen: v5e
topology: v5e:2x2
jax: 0.10.0
libtpu: 0.0.40
codegen_flags: <defaults>
</compile_context>

<pallas_src>
import functools

import jax
import jax.numpy as jnp
from jax.experimental import pallas as pl
from jax.experimental.pallas import tpu as pltpu


def _round_up(x, m):
    return ((x + m - 1) // m) * m


def _default_edge_dtype():
    # bf16 edge math on v6e/v7x (bf16 VPU/EUP); f32 on v5-generation chips.
    try:
        kind = jax.devices()[0].device_kind.lower()
    except Exception:  # pragma: no cover - be permissive about device queries
        kind = ""
    return jnp.float32 if "v5" in kind else jnp.bfloat16


def _gat_kernel(src_ref, dst_ref, h_ref, mask_ref, out_ref, *,
                tj, f_out, h_resident, edge_dtype):
    j = pl.program_id(1)

    @pl.when(j == 0)
    def _():
        out_ref[...] = jnp.zeros_like(out_ref)

    # -leakyrelu(s) = min(-s, -alpha*s), s = f_src_i + f_dst_j; negated /
    # alpha-scaled per-node terms precomputed in the wrapper.  3 VPU ops/elem.
    arg = jnp.minimum(src_ref[:, 0:1] + dst_ref[0:1, :],
                      src_ref[:, 1:2] + dst_ref[1:2, :])           # (TI, TJ) f32

    e = jnp.exp(arg.astype(edge_dtype))                            # EUP; bf16 on v6e/v7x
    e = jnp.where(mask_ref[...] != 0, e, jnp.zeros_like(e))        # i8 cmp + select

    if h_resident:
        start = pl.multiple_of(j * tj, tj)
        h_blk = h_ref[pl.ds(start, tj), :]                         # slice resident h
    else:
        h_blk = h_ref[...]

    # Numerator AND rowsum in one bf16 MXU matmul (ones column at lane f_out
    # of h), f32 accumulation directly into the resident output block.
    out_ref[...] += jnp.dot(e.astype(jnp.bfloat16), h_blk,
                            preferred_element_type=jnp.float32)

    @pl.when(j == pl.num_programs(1) - 1)
    def _():
        rowsum = out_ref[:, f_out:f_out + 1]                       # folded rowsum column
        inv = pl.reciprocal(rowsum, approx=True)                   # EUP slot
        hp = out_ref[...] * inv
        # concat=True  ->  ELU
        out_ref[...] = jnp.where(hp > 0.0, hp, jnp.exp(hp) - 1.0)


def sp_graph_attention_layer(x, W, a, adj, *, alpha=0.2, tile_i=None, tile_j=None,
                             edge_dtype=None, h_resident_bytes=12 * 1024 * 1024):
    """x: (N, F_in) f32, W: (F_in, F_out) f32, a: (1, 2*F_out) f32, adj: (N, N)."""
    N = x.shape[0]
    f_out = W.shape[1]

    if edge_dtype is None:
        edge_dtype = _default_edge_dtype()

    # ---- hoisted dense math (plain XLA GEMMs, overlap with the custom call) ----
    h = x.astype(jnp.float32) @ W.astype(jnp.float32)                  # (N, F_out)
    # single GEMM for both attention projections: columns [f_src, f_dst]
    fa = h @ a.astype(jnp.float32).reshape(2, f_out).T                 # (N, 2)

    # ---- tile sizes: TI multiple of 8, TJ multiple of 128 (lane dim of mask) ----
    if tile_i is None:
        tile_i = min(256, _round_up(N, 8))
    if tile_j is None:
        tile_j = min(1024, _round_up(N, 128))
    tile_i = _round_up(tile_i, 8)
    tile_j = _round_up(tile_j, 128)

    n_pad_i = _round_up(N, tile_i)
    n_pad_j = _round_up(N, tile_j)
    f_pad = _round_up(f_out + 1, 128)      # +1 lane reserved for the rowsum ones column

    # ---- per-node score terms, negated / alpha-scaled for the min-form leakyrelu ----
    src = jnp.zeros((n_pad_i, 2), jnp.float32)
    src = src.at[:N, 0].set(-fa[:, 0]).at[:N, 1].set((-alpha) * fa[:, 0])
    dst = jnp.zeros((2, n_pad_j), jnp.float32)
    dst = dst.at[0, :N].set(-fa[:, 1]).at[1, :N].set((-alpha) * fa[:, 1])

    # ---- h: bf16, lane-padded, ones column at lane f_out (rowsum via the MXU) ----
    h_p = jnp.zeros((n_pad_j, f_pad), jnp.float32)
    h_p = h_p.at[:N, :f_out].set(h).at[:, f_out].set(1.0)
    h_p = h_p.astype(jnp.bfloat16)

    # ---- adjacency nonzero pattern as int8 ----
    adj_nz = adj if adj.dtype in (jnp.bool_, jnp.int8) else (adj != 0)
    mask = (jnp.zeros((n_pad_i, n_pad_j), jnp.int8)
            .at[:N, :N].set(adj_nz.astype(jnp.int8)))

    grid = (n_pad_i // tile_i, n_pad_j // tile_j)
    h_resident = (n_pad_j * f_pad * 2) <= h_resident_bytes

    if h_resident:
        h_spec = pl.BlockSpec((n_pad_j, f_pad), lambda i, j: (0, 0))   # DMA'd once
    else:
        h_spec = pl.BlockSpec((tile_j, f_pad), lambda i, j: (j, 0))    # streamed per j

    cost = pl.CostEstimate(
        flops=2 * n_pad_i * n_pad_j * f_pad + 4 * n_pad_i * n_pad_j,
        transcendentals=n_pad_i * n_pad_j + n_pad_i * f_pad,
        bytes_accessed=n_pad_i * n_pad_j                               # int8 mask stream
        + (n_pad_j * f_pad * 2 if h_resident
           else grid[0] * n_pad_j * f_pad * 2)                         # h traffic
        + n_pad_i * f_pad * 4                                          # output
        + (n_pad_i + n_pad_j) * 8,                                     # score vectors
    )

    kernel = functools.partial(_gat_kernel, tj=tile_j, f_out=f_out,
                               h_resident=h_resident, edge_dtype=edge_dtype)

    out_padded = pl.pallas_call(
        kernel,
        out_shape=jax.ShapeDtypeStruct((n_pad_i, f_pad), jnp.float32),
        grid_spec=pltpu.PrefetchScalarGridSpec(
            num_scalar_prefetch=0,
            grid=grid,
            in_specs=[
                pl.BlockSpec((tile_i, 2), lambda i, j: (i, 0)),        # [-f_src, -a*f_src]
                pl.BlockSpec((2, tile_j), lambda i, j: (0, j)),        # [-f_dst; -a*f_dst]
                h_spec,                                                # bf16 h (+ones col)
                pl.BlockSpec((tile_i, tile_j), lambda i, j: (i, j)),   # int8 adjacency
            ],
            out_specs=pl.BlockSpec((tile_i, f_pad), lambda i, j: (i, 0)),
        ),
        compiler_params=pltpu.CompilerParams(
            # i (rows) is embarrassingly parallel -> megacore sharding; j is the
            # reduction axis.  On v7x, pltpu.CORE_PARALLEL on axis 0 is the
            # explicit alternative if "parallel" does not shard across both TCs.
            dimension_semantics=("parallel", "arbitrary"),
            # 48 MiB: under v7x's 64 MiB physical VMEM, ample headroom for the
            # <=12 MiB resident h (even double-buffered) plus tile buffers.
            vmem_limit_bytes=48 * 1024 * 1024,
        ),
        cost_estimate=cost,
    )(src, dst, h_p, mask)

    return out_padded[:N, :f_out]


def _reference(x, W, a, adj, alpha):
    """Pure-JAX f32 reference of the PyTorch forward (dense-masked equivalent)."""
    f_out = W.shape[1]
    h = x @ W
    f_src = h @ a[:, :f_out].T   # (N, 1)
    f_dst = h @ a[:, f_out:].T   # (N, 1)
    scores = f_src + f_dst.T
    lrelu = jnp.where(scores > 0.0, scores, alpha * scores)
    e = jnp.exp(-lrelu) * (adj != 0.0)
    rowsum = e.sum(axis=1, keepdims=True)
    h_prime = (e @ h) / rowsum
    return jnp.where(h_prime > 0.0, h_prime, jnp.exp(h_prime) - 1.0)


def _xavier_normal(key, shape, gain):
    fan_out, fan_in = shape[0], shape[1]
    std = gain * jnp.sqrt(2.0 / (fan_in + fan_out))
    return std * jax.random.normal(key, shape, dtype=jnp.float32)


if __name__ == "__main__":
    # Small shapes consistent with the module; tile_i=tile_j=128 so the demo
    # exercises a multi-tile (3, 3) grid with cross-tile accumulation and the
    # in-kernel slicing of the VMEM-resident h.
    N, IN_FEATURES, OUT_FEATURES = 300, 8, 16
    ALPHA = 0.2  # LeakyReLU negative slope; dropout = 0.0 (eval-mode semantics)

    key = jax.random.PRNGKey(0)
    k_x, k_w, k_a, k_adj = jax.random.split(key, 4)

    x = jax.random.normal(k_x, (N, IN_FEATURES), dtype=jnp.float32)
    W = _xavier_normal(k_w, (IN_FEATURES, OUT_FEATURES), gain=1.414)
    a = _xavier_normal(k_a, (1, 2 * OUT_FEATURES), gain=1.414)

    # random binary adjacency; add self-loops so every row has at least one edge
    # (isolated rows have rowsum=0 and are NaN in the PyTorch reference too).
    adj = (jax.random.uniform(k_adj, (N, N)) < 0.3).astype(jnp.float32)
    adj = jnp.maximum(adj, jnp.eye(N, dtype=jnp.float32))

    fn = jax.jit(functools.partial(sp_graph_attention_layer, alpha=ALPHA,
                                   tile_i=128, tile_j=128))
    out = jax.block_until_ready(fn(x, W, a, adj))

    ref = _reference(x, W, a, adj, ALPHA)
    assert out.shape == (N, OUT_FEATURES)
    # bf16 edge weights / aggregation + approx reciprocal -> a few e-2 agreement.
    assert jnp.allclose(out, ref, atol=5e-2, rtol=5e-2), "mismatch vs reference"

    print("KERNEL_OK")
</pallas_src>

<mosaic_0001>
module attributes {stable_mosaic.version = 11 : i64} {
  func.func @_gat_kernel(%arg0: i32, %arg1: i32, %arg2: memref<128x2xf32, #tpu.memory_space<vmem>>, %arg3: memref<2x128xf32, #tpu.memory_space<vmem>>, %arg4: memref<384x128xbf16, #tpu.memory_space<vmem>>, %arg5: memref<128x128xi8, #tpu.memory_space<vmem>>, %arg6: memref<128x128xf32, #tpu.memory_space<vmem>>) attributes {dimension_semantics = [#tpu.dimension_semantics<parallel>, #tpu.dimension_semantics<arbitrary>], iteration_bounds = array<i64: 3, 3>, scalar_prefetch = 0 : i64, scratch_operands = 0 : i64, tpu.core_type = #tpu.core_type<tc>, window_params = [{transform_indices = @transform_0, window_bounds = array<i64: 128, 2>}, {transform_indices = @transform_1, window_bounds = array<i64: 2, 128>}, {pipeline_mode = #tpu.pipeline_mode<synchronous>, transform_indices = @transform_2, window_bounds = array<i64: 384, 128>}, {transform_indices = @transform_3, window_bounds = array<i64: 128, 128>}, {transform_indices = @transform_4, window_bounds = array<i64: 128, 128>}]} {
    %c0_i32 = arith.constant 0 : i32
    %0 = arith.cmpi eq, %arg1, %c0_i32 : i32
    %1 = arith.extui %0 : i1 to i32
    %c0_i32_0 = arith.constant 0 : i32
    %2 = arith.cmpi ne, %1, %c0_i32_0 : i32
    scf.if %2 {
      %cst_16 = arith.constant 0.000000e+00 : f32
      %32 = vector.broadcast %cst_16 : f32 to vector<128x128xf32>
      %c0_17 = arith.constant 0 : index
      %c0_18 = arith.constant 0 : index
      %33 = vector.load %arg6[%c0_17, %c0_18] : memref<128x128xf32, #tpu.memory_space<vmem>>, vector<128x128xf32>
      tpu.vector_store %arg6[%c0_17, %c0_18], %32 {strides = array<i32>} : memref<128x128xf32, #tpu.memory_space<vmem>>, vector<128x128xf32>,
    } else {
    }
    %c0 = arith.constant 0 : index
    %c0_1 = arith.constant 0 : index
    %3 = vector.load %arg2[%c0, %c0_1] : memref<128x2xf32, #tpu.memory_space<vmem>>, vector<128x1xf32>
    %c0_2 = arith.constant 0 : index
    %c0_3 = arith.constant 0 : index
    %4 = vector.load %arg3[%c0_2, %c0_3] : memref<2x128xf32, #tpu.memory_space<vmem>>, vector<1x128xf32>
    %5 = vector.broadcast %3 : vector<128x1xf32> to vector<128x128xf32>
    %6 = vector.broadcast %4 : vector<1x128xf32> to vector<128x128xf32>
    %7 = arith.addf %5, %6 : vector<128x128xf32>
    %c0_4 = arith.constant 0 : index
    %c1 = arith.constant 1 : index
    %8 = vector.load %arg2[%c0_4, %c1] : memref<128x2xf32, #tpu.memory_space<vmem>>, vector<128x1xf32>
    %c1_5 = arith.constant 1 : index
    %c0_6 = arith.constant 0 : index
    %9 = vector.load %arg3[%c1_5, %c0_6] : memref<2x128xf32, #tpu.memory_space<vmem>>, vector<1x128xf32>
    %10 = vector.broadcast %8 : vector<128x1xf32> to vector<128x128xf32>
    %11 = vector.broadcast %9 : vector<1x128xf32> to vector<128x128xf32>
    %12 = arith.addf %10, %11 : vector<128x128xf32>
    %13 = arith.minimumf %7, %12 : vector<128x128xf32>
    %14 = arith.truncf %13 : vector<128x128xf32> to vector<128x128xbf16>
    %15 = math.exp %14 : vector<128x128xbf16>
    %c0_7 = arith.constant 0 : index
    %c0_8 = arith.constant 0 : index
    %16 = vector.load %arg5[%c0_7, %c0_8] : memref<128x128xi8, #tpu.memory_space<vmem>>, vector<128x128xi8>
    %c0_i8 = arith.constant 0 : i8
    %17 = vector.broadcast %c0_i8 : i8 to vector<128x128xi8>
    %18 = arith.cmpi ne, %16, %17 : vector<128x128xi8>
    %cst = arith.constant 0.000000e+00 : bf16
    %19 = vector.broadcast %cst : bf16 to vector<128x128xbf16>
    %20 = arith.select %18, %15, %19 : vector<128x128xi1>, vector<128x128xbf16>
    %c128_i32 = arith.constant 128 : i32
    %21 = arith.muli %arg1, %c128_i32 : i32
    %22 = tpu.assume_multiple %21, 128 : i32
    %23 = arith.index_cast %22 : i32 to index
    %c0_9 = arith.constant 0 : index
    %24 = vector.load %arg4[%23, %c0_9] : memref<384x128xbf16, #tpu.memory_space<vmem>>, vector<128x128xbf16>
    %c0_10 = arith.constant 0 : index
    %c0_11 = arith.constant 0 : index
    %25 = vector.load %arg6[%c0_10, %c0_11] : memref<128x128xf32, #tpu.memory_space<vmem>>, vector<128x128xf32>
    %cst_12 = arith.constant dense<0.000000e+00> : vector<128x128xf32>
    %26 = tpu.matmul %20, %24, %cst_12 {dimension_numbers = #tpu.dot_dimension_numbers<[1], [0], [0], [1], [0, 0, 1, 1], [], []>} : vector<128x128xbf16>, vector<128x128xbf16>, vector<128x128xf32> -> vector<128x128xf32>
    %27 = arith.addf %25, %26 : vector<128x128xf32>
    %c0_13 = arith.constant 0 : index
    %c0_14 = arith.constant 0 : index
    %28 = vector.load %arg6[%c0_13, %c0_14] : memref<128x128xf32, #tpu.memory_space<vmem>>, vector<128x128xf32>
    tpu.vector_store %arg6[%c0_13, %c0_14], %27 {strides = array<i32>} : memref<128x128xf32, #tpu.memory_space<vmem>>, vector<128x128xf32>,
    %c2_i32 = arith.constant 2 : i32
    %29 = arith.cmpi eq, %arg1, %c2_i32 : i32
    %30 = arith.extui %29 : i1 to i32
    %c0_i32_15 = arith.constant 0 : i32
    %31 = arith.cmpi ne, %30, %c0_i32_15 : i32
    scf.if %31 {
      %c0_16 = arith.constant 0 : index
      %c16 = arith.constant 16 : index
      %32 = vector.load %arg6[%c0_16, %c16] : memref<128x128xf32, #tpu.memory_space<vmem>>, vector<128x1xf32>
      %33 = tpu.reciprocal %32 {approx = true} : vector<128x1xf32> -> vector<128x1xf32>
      %c0_17 = arith.constant 0 : index
      %c0_18 = arith.constant 0 : index
      %34 = vector.load %arg6[%c0_17, %c0_18] : memref<128x128xf32, #tpu.memory_space<vmem>>, vector<128x128xf32>
      %35 = vector.broadcast %33 : vector<128x1xf32> to vector<128x128xf32>
      %36 = arith.mulf %34, %35 : vector<128x128xf32>
      %cst_19 = arith.constant 0.000000e+00 : f32
      %37 = vector.broadcast %cst_19 : f32 to vector<128x128xf32>
      %38 = arith.cmpf ogt, %36, %37 : vector<128x128xf32>
      %39 = math.exp %36 : vector<128x128xf32>
      %cst_20 = arith.constant 1.000000e+00 : f32
      %40 = vector.broadcast %cst_20 : f32 to vector<128x128xf32>
      %41 = arith.subf %39, %40 : vector<128x128xf32>
      %42 = arith.select %38, %36, %41 : vector<128x128xi1>, vector<128x128xf32>
      %c0_21 = arith.constant 0 : index
      %c0_22 = arith.constant 0 : index
      %43 = vector.load %arg6[%c0_21, %c0_22] : memref<128x128xf32, #tpu.memory_space<vmem>>, vector<128x128xf32>
      tpu.vector_store %arg6[%c0_21, %c0_22], %42 {strides = array<i32>} : memref<128x128xf32, #tpu.memory_space<vmem>>, vector<128x128xf32>,
    } else {
    }
    return
  }
  func.func @transform_0(%arg0: i32, %arg1: i32) -> (i32, i32) {
    %c0_i32 = arith.constant 0 : i32
    %c0_i32_0 = arith.constant 0 : i32
    return %arg0, %c0_i32 : i32, i32
  }
  func.func @transform_1(%arg0: i32, %arg1: i32) -> (i32, i32) {
    %c0_i32 = arith.constant 0 : i32
    %c0_i32_0 = arith.constant 0 : i32
    return %c0_i32, %arg1 : i32, i32
  }
  func.func @transform_2(%arg0: i32, %arg1: i32) -> (i32, i32) {
    %c0_i32 = arith.constant 0 : i32
    %c0_i32_0 = arith.constant 0 : i32
    %c0_i32_1 = arith.constant 0 : i32
    return %c0_i32, %c0_i32_0 : i32, i32
  }
  func.func @transform_3(%arg0: i32, %arg1: i32) -> (i32, i32) {
    %c0_i32 = arith.constant 0 : i32
    return %arg0, %arg1 : i32, i32
  }
  func.func @transform_4(%arg0: i32, %arg1: i32) -> (i32, i32) {
    %c0_i32 = arith.constant 0 : i32
    %c0_i32_0 = arith.constant 0 : i32
    return %arg0, %c0_i32 : i32, i32
  }
}

</mosaic_0001>

<bundles_post_ra>
// kernel: sp_graph_attention_layer.1
= control target key start
LH: loop header
LB: loop body
LE: loop exit
PB: predicated region body
PF: predicated region fallthrough
CT: control target
= control target key end

     0   :  { %s1829_s15 = smov 0   ;;  %s1831_s16 = smov 0   ;;  %s2335_s0 = inlined_call_operand.vmem [shape: f32[384,2], index: 0, kind: input, shape index: {}]   ;;  %s2336_s1 = inlined_call_operand.vmem [shape: f32[2,384], index: 1, kind: input, shape index: {}]   ;;  %s2337_s2 = inlined_call_operand.vmem [shape: bf16[384,128], index: 2, kind: input, shape index: {}]   ;;  %s2338_s3 = inlined_call_operand.vmem [shape: s8[384,384], index: 3, kind: input, shape index: {}]   ;;  %s2339_s4 = inlined_call_operand.vmem [shape: f32[384,128], index: 4, kind: output, shape index: {}]  }
   0x1   :  { %s1833_s17 = smov 0   ;;  %s1835_s18 = smov 0  }
   0x2   :  { %s1837_s19 = smov 0   ;;  %s1839_s20 = smov 0  }
   0x3   :  { %s1841_s21 = smov 0  }
   0x4 LB: > { %s23_s22 = sadd.s32 1, %s1790_s19  ;;  %s26_s23 = sadd.s32 1, %s1794_s20  ;;  %s1798_s21 = sphi %s1841_s21, %s14_s21   ;;  %s1794_s20 = sphi %s1839_s20, %s2357_s20   ;;  %s1790_s19 = sphi %s1837_s19, %s2356_s19   ;;  %s1786_s18 = sphi %s1835_s18, %s2355_s18   ;;  %s1782_s17 = sphi %s1833_s17, %s2354_s17   ;;  %s1778_s16 = sphi %s1831_s16, %s2353_s16   ;;  %s1774_s15 = sphi %s1829_s15, %s2352_s15  }
   0x5   : > { %p24_p0 = scmp.ge.s32.totalorder %s23_s22, 3  ;;  %p115_p1 = scmp.ne.s32.totalorder %s1778_s16, %s1774_s15 }
   0x6   : > { %p116_p2 = scmp.eq.s32.totalorder %s1798_s21, 0  ;;  %s108_s27 = sadd.s32 1, %s1778_s16 }
   0x7   : > { %s2359_s22 = smov (%p24_p0, %s23_s22), 0  ;;  %s2361_s23 = smov (!%p24_p0, %s26_s23), %s1794_s20 }
   0x8   : > { %p117_p3 = por %p116_p2, %p115_p1  ;;  %p28_p4 = scmp.ge.s32.totalorder %s2361_s23, 3 }
   0x9   : > { %s104_s24 = ssub.s32 %s1790_s19, %s2359_s22  ;;  %p1434_p6 = scmp.ge.s32.totalorder %s1798_s21, 9 }
   0xa   : > { %s2363_s23 = smov (%p28_p4, %s2361_s23), 0 }
   0xb   : > { %s103_s25 = ssub.s32 %s1794_s20, %s2363_s23  ;;  %170 = sbr.rel (%p1434_p6) target bundleno = 27 (0x1b), region = 20 }
   0xc   : > { %s105_s26 = sor.u32 %s104_s24, %s103_s25 }
   0xd   : > { %p106_p5 = scmp.eq.s32.totalorder %s105_s26, 0 }
   0xf   : > { %s1880_s28 = scalar_select %p106_p5, %s1778_s16, %s108_s27  }
  0x10   : > { %189 = sbr.rel (!%p117_p3) target bundleno = 27 (0x1b), region = 32  ;;  %s191_s29 = sand.u32 (%p117_p3), 1, %s1778_s16  }
  0x11   : > { %s1564_s30 = smul.u32 (%p117_p3), 12, %s1794_s20  ;;  %s1435_s5 = sshll.u32 (%p117_p3), %s191_s29, 5 }
  0x12   : > { %s193_s11 = scalar_lea.vmem (%p117_p3), [#allocation2], %s1435_s5 }
  0x13   : > { %s196_s6 = sadd.s32 (%p117_p3), %s1790_s19, %s1564_s30 }
  0x14   : > { %s1438_s7 = sshll.u32 (%p117_p3), %s196_s6, 3 }
  0x15   : > { %s198_s10 = scalar_lea.vmem %s2338_s3, %s1438_s7 }
  0x16   : > { %v233_v0 = vld [vmem:[%s198_s10] sm:$0xff]  ;;  %v235_v1 = vld [vmem:[%s198_s10 + $0x18] sm:$0xff]  ;;  %v237_v2 = vld [vmem:[%s198_s10 + $0x30] sm:$0xff] }
  0x17   : > { %234 = vst [vmem:[%s193_s11] sm:$0xff] %v233_v0  ;;  %v239_v3 = vld [vmem:[%s198_s10 + $0x48] sm:$0xff] }
  0x18   : > { %236 = vst [vmem:[%s193_s11 + $0x8] sm:$0xff] %v235_v1 }
  0x19   : > { %238 = vst [vmem:[%s193_s11 + $0x10] sm:$0xff] %v237_v2 }
  0x1a   : > { %240 = vst [vmem:[%s193_s11 + $0x18] sm:$0xff] %v239_v3 }
  0x1b PF: > { %p1439_p7 = scmp.ge.s32.totalorder %s1798_s21, 1  ;;  %p245_p8 = scmp.lt.s32.totalorder %s1798_s21, 10 }
  0x1d   : > { %p246_p9 = pnand %p1439_p7, %p245_p8 }
  0x1e   : > { %s252_s12 = sand.u32 (!%p246_p9), 1, %s1774_s15   ;;  %s1441_s13 = sshll.u32 (!%p246_p9), %s1786_s18, 4 }
  0x1f   : > { %249 = sbr.rel (%p246_p9) target bundleno = 612 (0x264), region = 70  ;;  %s1440_s14 = sshll.u32 (!%p246_p9), %s252_s12, 5 }
  0x20   : > { %p287_p10 = scmp.lt.s32.totalorder (!%p246_p9), %s1441_s13, 47  ;;  %p292_p11 = scmp.lt.s32.totalorder (!%p246_p9), %s1782_s17, 2 }
  0x21   : > { %s1910_s9 = scalar_lea.vmem (!%p246_p9), [#allocation2], %s1440_s14  ;;  %p1446_p12 = scmp.ne.s32.totalorder (!%p246_p9), %s1782_s17, 0 }
  0x24   : > { %s2365_s13 = smov (!%p287_p10, %s1441_s13), 47  ;;  %310 = sbr.rel (%p1446_p12) target bundleno = 58 (0x3a), region = 78 }
  0x25   : > { %s293_s24 = scalar_select %p292_p11, %s1782_s17, 2 }
  0x26   : > { %s1442_s25 = sshll.u32 %s2365_s13, 3 }
  0x27   : > { %s1898_s29 = scalar_lea.vmem %s2335_s0, %s1442_s25  ;;  %s1443_s30 = sshll.u32 %s293_s24, 1 }
  0x28   : > { %s1903_s7 = scalar_lea.vmem %s2336_s1, %s1443_s30  ;;  %s1908_s18 = scalar_lea.vmem %s2339_s4, %s1442_s25 }
  0x29   : > { %v1800_v4 = vmov 0.0  }
  0x2a   : > { %311 = vst [vmem:[%s1908_s18] sm:$0xff] %v1800_v4 }
  0x2b   : > { %312 = vst [vmem:[%s1908_s18 + $0x8] sm:$0xff] %v1800_v4 }
  0x2c   : > { %313 = vst [vmem:[%s1908_s18 + $0x10] sm:$0xff] %v1800_v4 }
  0x2d   : > { %314 = vst [vmem:[%s1908_s18 + $0x18] sm:$0xff] %v1800_v4 }
  0x2e   : > { %315 = vst [vmem:[%s1908_s18 + $0x20] sm:$0xff] %v1800_v4 }
  0x2f   : > { %316 = vst [vmem:[%s1908_s18 + $0x28] sm:$0xff] %v1800_v4 }
  0x30   : > { %317 = vst [vmem:[%s1908_s18 + $0x30] sm:$0xff] %v1800_v4 }
  0x31   : > { %318 = vst [vmem:[%s1908_s18 + $0x38] sm:$0xff] %v1800_v4 }
  0x32   : > { %319 = vst [vmem:[%s1908_s18 + $0x40] sm:$0xff] %v1800_v4 }
  0x33   : > { %320 = vst [vmem:[%s1908_s18 + $0x48] sm:$0xff] %v1800_v4 }
  0x34   : > { %321 = vst [vmem:[%s1908_s18 + $0x50] sm:$0xff] %v1800_v4 }
  0x35   : > { %322 = vst [vmem:[%s1908_s18 + $0x58] sm:$0xff] %v1800_v4 }
  0x36   : > { %323 = vst [vmem:[%s1908_s18 + $0x60] sm:$0xff] %v1800_v4 }
  0x37   : > { %324 = vst [vmem:[%s1908_s18 + $0x68] sm:$0xff] %v1800_v4 }
  0x38   : > { %325 = vst [vmem:[%s1908_s18 + $0x70] sm:$0xff] %v1800_v4 }
  0x39   : > { %326 = vst [vmem:[%s1908_s18 + $0x78] sm:$0xff] %v1800_v4 }
  0x3a PF: > { %v339_v5 = vld [vmem:[%s1898_s29 + $0x60] sm:$0xff]  ;;  %v1801_v7 = vmov 1   ;;  %v1802_v8 = vmov 0   ;;  %v341_v9 = vld [vmem:[%s1898_s29 + $0x70] sm:$0xff]  ;;  %v340_v10 = vld [vmem:[%s1898_s29 + $0x68] sm:$0xff]  ;;  %s1479_s10 = sshll.u32 %s1782_s17, 7 }
  0x3b   : > { %v335_v6 = vld [vmem:[%s1898_s29 + $0x40] sm:$0xff]  ;;  %1627 = vset.pattern.permute.xlu0 %v1801_v7  ;;  %1626 = vset.pattern.permute.xlu2 %v1801_v7  ;;  %v336_v11 = vld [vmem:[%s1898_s29 + $0x48] sm:$0xff]  ;;  %v337_v16 = vld [vmem:[%s1898_s29 + $0x50] sm:$0xff]  ;;  %s888_s11 = sshra.s32 %s1479_s10, 3  ;;  %v2002_v3 = vunpack.c.l.b16 %v1802_v8  ;;  %p1513_p13 = scmp.ne.s32.totalorder %s1782_s17, 2 }
  0x3c   : > { %1625 = vset.pattern.permute.xlu1 %v1802_v8  ;;  %491 = vperm.xlu0 %1627, %v339_v5   ;;  %v327_v12 = vld [vmem:[%s1898_s29] sm:$0xff]  ;;  %v328_v14 = vld [vmem:[%s1898_s29 + $0x8] sm:$0xff]  ;;  %v342_v17 = vld [vmem:[%s1898_s29 + $0x78] sm:$0xff]  ;;  %s1480_s12 = sshll.u32 %s888_s11, 2 }
  0x3d   : > { %406 = vperm.xlu1 %1625, %v339_v5   ;;  %475 = vperm.xlu2 %1626, %v335_v6   ;;  %v331_v13 = vld [vmem:[%s1898_s29 + $0x20] sm:$0xff]  ;;  %v332_v15 = vld [vmem:[%s1898_s29 + $0x28] sm:$0xff]  ;;  %v338_v18 = vld [vmem:[%s1898_s29 + $0x58] sm:$0xff]  ;;  %s1957_s24 = scalar_lea.vmem %s2337_s2, %s1480_s12 }
  0x3e   : > { %v334_v19 = vld [vmem:[%s1898_s29 + $0x38] sm:$0xff]  ;;  %v329_v20 = vld [vmem:[%s1898_s29 + $0x10] sm:$0xff]  ;;  %v1537_v27 = vld [vmem:[%s1957_s24 + $0x28] sm:$0xff] }
  0x3f   : > { %v333_v21 = vld [vmem:[%s1898_s29 + $0x30] sm:$0xff]  ;;  %v330_v22 = vld [vmem:[%s1898_s29 + $0x18] sm:$0xff]  ;;  %v1536_v29 = vld [vmem:[%s1957_s24 + $0x20] sm:$0xff] }
  0x40   : > { %v1539_v24 = vld [vmem:[%s1957_s24 + $0x38] sm:$0xff]  ;;  %v1538_v25 = vld [vmem:[%s1957_s24 + $0x30] sm:$0xff]  ;;  %v1977_v35 = vld [vmem:[%s1903_s7 + $0x1] ss:$0 sm:$0xff] }
  0x41   : > { %1542 = vmatpush.bf16.msra.mxu3 %v1539_v24  ;;  %1541 = vmatpush.bf16.msra.mxu2 %v1539_v24  ;;  %v622_v28 = vld [vmem:[%s1910_s9 + $0x18] sm:$0xff]  ;;  %v621_v34 = vld [vmem:[%s1910_s9 + $0x10] sm:$0xff]  ;;  %v1980_v36 = vld [vmem:[%s1903_s7] ss:$0 sm:$0xff] }
  0x42   : > { %1020 = vmatpush.bf16.msra.mxu0 %v1539_v24  ;;  %1540 = vmatpush.bf16.msra.mxu1 %v1539_v24  ;;  %vm626_vm0 = vnez %v622_v28  ;;  %v1535_v32 = vld [vmem:[%s1957_s24 + $0x18] sm:$0xff]  ;;  %v1534_v37 = vld [vmem:[%s1957_s24 + $0x10] sm:$0xff]  ;;  %vm625_vm1 = vnez %v621_v34  ;;  %v1533_v45 = vld [vmem:[%s1957_s24 + $0x8] sm:$0xff] }
  0x43   : > { %v1969_v30 = vsel %vm626_vm0, 16843009, %v1802_v8  ;;  %v1984_v41 = vsel %vm625_vm1, 16843009, %v1802_v8  ;;  %v1532_v50 = vld [vmem:[%s1957_s24] sm:$0xff] }
  0x44   : > { %499 = vperm.xlu0 %1627, %v341_v9   ;;  %v643_v33 = vunpack.c.0.s8 %v1969_v30  ;;  %v644_v46 = vunpack.c.1.s8 %v1969_v30  ;;  %v639_v48 = vunpack.c.0.s8 %v1984_v41  ;;  %v640_v54 = vunpack.c.1.s8 %v1984_v41  ;;  %v619_v59 = vld [vmem:[%s1910_s9] sm:$0xff] }
  0x45   : > { %411 = vperm.xlu1 %1625, %v340_v10   ;;  %479 = vperm.xlu2 %1626, %v336_v11   ;;  %vm623_vm3 = vnez %v619_v59 }
  0x46   : > { %1545 = vmatpush.bf16.msra.mxu3 %v1538_v25  ;;  %1544 = vmatpush.bf16.msra.mxu2 %v1538_v25  ;;  %v671_v39 = vpack.c.b16 %v643_v33, %v643_v33  ;;  %v673_v51 = vpack.c.b16 %v644_v46, %v644_v46  ;;  %v663_v55 = vpack.c.b16 %v639_v48, %v639_v48  ;;  %v2005_v5 = vsel %vm623_vm3, 16843009, %v1802_v8 }
  0x47   : > { %1021 = vmatpush.bf16.msra.mxu0 %v1538_v25  ;;  %1543 = vmatpush.bf16.msra.mxu1 %v1538_v25  ;;  %v665_v62 = vpack.c.b16 %v640_v54, %v640_v54  ;;  %v631_v24 = vunpack.c.0.s8 %v2005_v5 }
  0x48   : > { %v672_v47 = vpack.c.b8 %v671_v39, %v671_v39  ;;  %v674_v57 = vpack.c.b8 %v673_v51, %v673_v51  ;;  %v664_v61 = vpack.c.b8 %v663_v55, %v663_v55 }
  0x49   : > { %v666_v4 = vpack.c.b8 %v665_v62, %v665_v62  ;;  %v647_v39 = vpack.c.b16 %v631_v24, %v631_v24 }
  0x4a   : > { %1548 = vmatpush.bf16.msra.mxu3 %v1537_v27  ;;  %1547 = vmatpush.bf16.msra.mxu2 %v1537_v27  ;;  %vm691_vm2 = vnez %v672_v47  ;;  %vm692_vm4 = vnez %v674_v57  ;;  %vm687_vm5 = vnez %v664_v61 }
  0x4b   : > { %1022 = vmatpush.bf16.msra.mxu0 %v1537_v27  ;;  %1546 = vmatpush.bf16.msra.mxu1 %v1537_v27  ;;  %v707_v58 = vsel %vm691_vm2, 16843009, %v1802_v8  ;;  %vm688_vm6 = vnez %v666_v4  ;;  %v648_v61 = vpack.c.b8 %v647_v39, %v647_v39 }
  0x4c   : > { %1637 = vset.pattern.permute.xlu0 %v1802_v8  ;;  %v747_v63 = vunpack.c.1.s8 %v707_v58  ;;  %v748_v0 = vunpack.c.0.s8 %v707_v58 }
  0x4d   : > { %1628 = vset.pattern.permute.xlu1 %v1801_v7  ;;  %1629 = vset.pattern.permute.xlu2 %v1802_v8  ;;  %vm679_vm15 = vnez %v648_v61 }
  0x4e   : > { %495 = vperm.xlu1 %1628, %v340_v10   ;;  %386 = vperm.xlu0 %1637, %v335_v6   ;;  %v2009_v10 = vunpack.c.h.b16 %v1802_v8 }
  0x4f   : > { %346 = vperm.xlu2 %1629, %v327_v12   ;;  %1551 = vmatpush.bf16.msra.mxu3 %v1536_v29 }
  0x50   : > { %1550 = vmatpush.bf16.msra.mxu2 %v1536_v29  ;;  %1023 = vmatpush.bf16.msra.mxu0 %v1536_v29 }
  0x51   : > { %1549 = vmatpush.bf16.msra.mxu1 %v1536_v29 }
  0x53   : > { %1554 = vmatpush.bf16.msra.mxu3 %v1535_v32 }
  0x54   : > { %1553 = vmatpush.bf16.msra.mxu2 %v1535_v32  ;;  %1024 = vmatpush.bf16.msra.mxu0 %v1535_v32 }
  0x55   : > { %1552 = vmatpush.bf16.msra.mxu1 %v1535_v32 }
  0x56   : > { %1630 = vset.pattern.permute.xlu1 %v1802_v8  ;;  %391 = vperm.xlu0 %1637, %v336_v11   ;;  %v2011_v11 = vunpack.i.l.s16 %v748_v0 }
  0x57   : > { %366 = vperm.xlu2 %1629, %v331_v13   ;;  %351 = vperm.xlu1 %1630, %v328_v14  }
  0x58   : > { %1557 = vmatpush.bf16.msra.mxu3 %v1534_v37  ;;  %1556 = vmatpush.bf16.msra.mxu2 %v1534_v37  ;;  %vm847_vm7 = vcmp.ne.s32.totalorder %v2011_v11, %v2002_v3 }
  0x59   : > { %1025 = vmatpush.bf16.msra.mxu0 %v1534_v37  ;;  %1555 = vmatpush.bf16.msra.mxu1 %v1534_v37 }
  0x5c   : > { %1560 = vmatpush.bf16.msra.mxu3 %v1533_v45  ;;  %1559 = vmatpush.bf16.msra.mxu2 %v1533_v45 }
  0x5d   : > { %1026 = vmatpush.bf16.msra.mxu0 %v1533_v45  ;;  %1558 = vmatpush.bf16.msra.mxu1 %v1533_v45 }
  0x5e   : > { %371 = vperm.xlu0 %1637, %v332_v15  }
  0x5f   : > { %1632 = vset.pattern.permute.xlu2 %v1801_v7  ;;  %1631 = vset.pattern.permute.xlu1 %v1801_v7 }
  0x60   : > { %447 = vperm.xlu2 %1632, %v328_v14   ;;  %443 = vperm.xlu1 %1631, %v327_v12   ;;  %v2013_v12 = vunpack.i.l.s16 %v747_v63 }
  0x61   : > { %1563 = vmatpush.bf16.msra.mxu3 %v1532_v50  ;;  %1562 = vmatpush.bf16.msra.mxu2 %v1532_v50 }
  0x62   : > { %1027 = vmatpush.bf16.msra.mxu0 %v1532_v50  ;;  %1561 = vmatpush.bf16.msra.mxu1 %v1532_v50  ;;  %vm848_vm9 = vcmp.ne.s32.totalorder %v2013_v12, %v2009_v10 }
  0x63   : > { %vm2058_vm13 = vmpackc.low %vm848_vm9, %vm847_vm7 }
  0x66   : > { %396 = vperm.xlu0 %1637, %v337_v16  }
  0x68   : > { %463 = vperm.xlu2 %1632, %v332_v15   ;;  %459 = vperm.xlu1 %1631, %v331_v13  }
  0x6e   : > { %421 = vperm.xlu0 %1637, %v342_v17  }
  0x70   : > { %1634 = vset.pattern.permute.xlu2 %v1802_v8  ;;  %1633 = vset.pattern.permute.xlu1 %v1802_v8 }
  0x71   : > { %416 = vperm.xlu2 %1634, %v341_v9   ;;  %401 = vperm.xlu1 %1633, %v338_v18   ;;  %v708_v9 = vsel %vm692_vm4, 16843009, %v1802_v8 }
  0x72   : > { %v750_v25 = vunpack.c.1.s8 %v708_v9  ;;  %v751_v27 = vunpack.c.0.s8 %v708_v9 }
  0x74   : > { %v1473_v46 = vunpack.i.l.s16 %v751_v27  ;;  %v1474_v47 = vunpack.i.l.s16 %v750_v25  ;;  %v695_v25 = vsel %vm679_vm15, 16843009, %v1802_v8 }
  0x76   : > { %381 = vperm.xlu0 %1637, %v334_v19   ;;  %vm854_vm10 = vcmp.ne.s32.totalorder %v1473_v46, %v2002_v3  ;;  %vm855_vm11 = vcmp.ne.s32.totalorder %v1474_v47, %v2009_v10 }
  0x77   : > { %vm856_vm1 = vmpackc.low %vm855_vm11, %vm854_vm10 }
  0x79   : > { %1636 = vset.pattern.permute.xlu2 %v1801_v7  ;;  %1635 = vset.pattern.permute.xlu1 %v1801_v7 }
  0x7a   : > { %487 = vperm.xlu2 %1636, %v338_v18   ;;  %483 = vperm.xlu1 %1635, %v337_v16  }
  0x7e   : > { %1642 = vset.pattern.permute.xlu0 %v1801_v7 }
  0x82   : > { %1638 = vset.pattern.permute.xlu2 %v1802_v8  ;;  %503 = vperm.xlu1 %1635, %v342_v17   ;;  %v620_v17 = vld [vmem:[%s1910_s9 + $0x8] sm:$0xff] }
  0x83   : > { %356 = vperm.xlu2 %1638, %v329_v20   ;;  %vm624_vm8 = vnez %v620_v17 }
  0x8a   : > { %1639 = vset.pattern.permute.xlu1 %v1802_v8 }
  0x8b   : > { %376 = vperm.xlu2 %1638, %v333_v21   ;;  %361 = vperm.xlu1 %1639, %v330_v22  }
  0x93   : > { %1641 = vset.pattern.permute.xlu2 %v1801_v7  ;;  %1640 = vset.pattern.permute.xlu1 %v1801_v7 }
  0x94   : > { %455 = vperm.xlu2 %1641, %v330_v22   ;;  %451 = vperm.xlu1 %1640, %v329_v20   ;;  %v703_v20 = vsel %vm687_vm5, 16843009, %v1802_v8 }
  0x95   : > { %v735_v32 = vunpack.c.1.s8 %v703_v20  ;;  %v736_v33 = vunpack.c.0.s8 %v703_v20 }
  0x97   : > { %v1959_v23 = vpop.permute.xlu2 %475  ;;  %v2039_v55 = vunpack.i.l.s16 %v736_v33 }
  0x98   : > { %v515_v2 = vadd.f32 %v1977_v35, %v1959_v23 }
  0x99   : > { %vm819_vm14 = vcmp.ne.s32.totalorder %v2039_v55, %v2002_v3 }
  0x9c   : > { %471 = vperm.xlu2 %1641, %v334_v19   ;;  %467 = vperm.xlu1 %1640, %v333_v21   ;;  %v632_v21 = vunpack.c.1.s8 %v2005_v5 }
  0x9e   : > { %v649_v34 = vpack.c.b16 %v632_v21, %v632_v21 }
  0x9f   : > { %v1963_v26 = vpop.permute.xlu2 %479 }
  0xa0   : > { %v516_v18 = vadd.f32 %v1977_v35, %v1963_v26  ;;  %v704_v26 = vsel %vm688_vm6, 16843009, %v1802_v8 }
  0xa1   : > { %v738_v63 = vunpack.c.1.s8 %v704_v26 }
  0xa9   : > { %v1971_v31 = vpop.permute.xlu2 %346 }
  0xae   : > { %v492_v38 = vpop.permute.xlu0 %491 }
  0xaf   : > { %v407_v40 = vpop.permute.xlu1 %406  ;;  %v519_v42 = vadd.f32 %v1977_v35, %v492_v38 }
  0xb0   : > { %v437_v43 = vadd.f32 %v1980_v36, %v407_v40  ;;  %v2030_v40 = vsel %vm624_vm8, 16843009, %v1802_v8 }
  0xb1   : > { %v1988_v44 = vpop.permute.xlu2 %366  ;;  %v636_v57 = vunpack.c.1.s8 %v2030_v40  ;;  %v635_v0 = vunpack.c.0.s8 %v2030_v40 }
  0xb2   : > { %v535_v49 = vmin.f32 %v437_v43, %v519_v42  ;;  %v2034_v42 = vadd.f32 %v1980_v36, %v1971_v31 }
  0xb3   : > { %v657_v9 = vpack.c.b16 %v636_v57, %v636_v57  ;;  %v429_v57 = vadd.f32 %v1980_v36, %v1988_v44 }
  0xb4   : > { %v551_v56 = vpack.c.bf16 %v535_v49, %v535_v49 }
  0xb5   : > { %v658_v27 = vpack.c.b8 %v657_v9, %v657_v9 }
  0xb6   : > { %v1994_v52 = vpop.permute.xlu0 %499  ;;  %v567_v1 = vunpack.c.l.bf16 %v551_v56  ;;  %v650_v56 = vpack.c.b8 %v649_v34, %v649_v34 }
  0xb7   : > { %v412_v53 = vpop.permute.xlu1 %411  ;;  %vm684_vm4 = vnez %v658_v27 }
  0xb8   : > { %v595_v13 = vmul.f32 1.442695, %v567_v1  ;;  %v438_v14 = vadd.f32 %v1980_v36, %v412_v53  ;;  %v739_v53 = vunpack.c.0.s8 %v704_v26  ;;  %vm2047_vm12 = vnez %v650_v56 }
  0xb9   : > { %v696_v12 = vsel %vm2047_vm12, 16843009, %v1802_v8 }
  0xba   : > { %v448_v60 = vpop.permute.xlu2 %447  ;;  %1645 = vpow2.f32 %v595_v13 }
  0xbb   : > { %v508_v43 = vadd.f32 %v1977_v35, %v448_v60  ;;  %v1464_v60 = vunpack.i.l.s16 %v735_v32 }
  0xbd   : > { %vm820_vm0 = vcmp.ne.s32.totalorder %v1464_v60, %v2009_v10 }
  0xbe   : > { %vm821_vm5 = vmpackc.low %vm820_vm0, %vm819_vm14 }
  0xc0   : > { %v496_v6 = vpop.permute.xlu1 %495  ;;  %v387_v7 = vpop.permute.xlu0 %386 }
  0xc1   : > { %v520_v15 = vadd.f32 %v1977_v35, %v496_v6  ;;  %v433_v16 = vadd.f32 %v1980_v36, %v387_v7  ;;  %v1646_v31 = vpop.eup %1645 }
  0xc2   : > { %v464_v19 = vpop.permute.xlu2 %463  ;;  %v615_v6 = vpack.c.bf16 %v1646_v31, %v1646_v31 }
  0xc3   : > { %v536_v22 = vmin.f32 %v438_v14, %v520_v15  ;;  %v531_v23 = vmin.f32 %v433_v16, %v515_v2  ;;  %v1465_v2 = vunpack.i.l.s16 %v739_v53  ;;  %v512_v13 = vadd.f32 %v1977_v35, %v464_v19 }
  0xc4   : > { %v655_v19 = vpack.c.b16 %v635_v0, %v635_v0  ;;  %v883_v24 = vsel %vm2058_vm13, %v615_v6, 0 }
  0xc5   : > { %v552_v28 = vpack.c.bf16 %v536_v22, %v536_v22  ;;  %v547_v29 = vpack.c.bf16 %v531_v23, %v531_v23  ;;  %vm826_vm2 = vcmp.ne.s32.totalorder %v1465_v2, %v2002_v3 }
  0xc7   : > { %v568_v37 = vunpack.c.l.bf16 %v552_v28  ;;  %v563_v38 = vunpack.c.l.bf16 %v547_v29 }
  0xc8   : > { %v392_v45 = vpop.permute.xlu0 %391 }
  0xc9   : > { %v597_v48 = vmul.f32 1.442695, %v568_v37  ;;  %v587_v49 = vmul.f32 1.442695, %v563_v38  ;;  %v434_v50 = vadd.f32 %v1980_v36, %v392_v45  ;;  %v352_v51 = vpop.permute.xlu1 %351  ;;  %v714_v37 = vunpack.c.1.s8 %v696_v12 }
  0xca   : > { %v426_v54 = vadd.f32 %v1980_v36, %v352_v51  ;;  %v656_v38 = vpack.c.b8 %v655_v19, %v655_v19  ;;  %v952_v45 = vunpack.c.l.b16 %v883_v24 }
  0xcb   : > { %1647 = vpow2.f32 %v597_v48  ;;  %v532_v58 = vmin.f32 %v434_v50, %v516_v18  ;;  %v2042_v59 = vpop.permute.xlu2 %416  ;;  %v1466_v18 = vunpack.i.l.s16 %v738_v63  ;;  %v712_v48 = vunpack.c.0.s8 %v695_v25 }
  0xcc   : > { %v524_v62 = vmin.f32 %v426_v54, %v508_v43  ;;  %1649 = vpow2.f32 %v587_v49  ;;  %v715_v49 = vunpack.c.0.s8 %v696_v12  ;;  %v711_v54 = vunpack.c.1.s8 %v695_v25 }
  0xcd   : > { %v548_v1 = vpack.c.bf16 %v532_v58, %v532_v58  ;;  %vm827_vm3 = vcmp.ne.s32.totalorder %v1466_v18, %v2009_v10  ;;  %vm2087_vm6 = vnez %v656_v38  ;;  %v1450_v55 = vunpack.i.l.s16 %v714_v37 }
  0xce   : > { %v540_v4 = vpack.c.bf16 %v524_v62, %v524_v62  ;;  %vm828_vm7 = vmpackc.low %vm827_vm3, %vm826_vm2  ;;  %v700_v58 = vsel %vm684_vm4, 16843009, %v1802_v8  ;;  %v1447_v63 = vunpack.i.l.s16 %v712_v48  ;;  %v1449_v0 = vunpack.i.l.s16 %v715_v49 }
  0xcf   : > { %v564_v14 = vunpack.c.l.bf16 %v548_v1  ;;  %v699_v44 = vsel %vm2087_vm6, 16843009, %v1802_v8  ;;  %v1448_v7 = vunpack.i.l.s16 %v711_v54  ;;  %v726_v9 = vunpack.c.1.s8 %v700_v58 }
  0xd0   : > { %v556_v16 = vunpack.c.l.bf16 %v540_v4  ;;  %v372_v17 = vpop.permute.xlu0 %371  ;;  %vm770_vm8 = vcmp.ne.s32.totalorder %v1449_v0, %v2002_v3  ;;  %vm771_vm9 = vcmp.ne.s32.totalorder %v1450_v55, %v2009_v10  ;;  %v724_v19 = vunpack.c.0.s8 %v699_v44 }
  0xd1   : > { %v1648_v20 = vpop.eup %1647  ;;  %v589_v21 = vmul.f32 1.442695, %v564_v14  ;;  %v430_v11 = vadd.f32 %v1980_v36, %v372_v17  ;;  %v641_v12 = vunpack.c.2.s8 %v1984_v41  ;;  %vm763_vm10 = vcmp.ne.s32.totalorder %v1447_v63, %v2002_v3  ;;  %vm2110_vm12 = vmpackc.low %vm771_vm9, %vm770_vm8 }
  0xd2   : > { %v444_v22 = vpop.permute.xlu1 %443  ;;  %v616_v23 = vpack.c.bf16 %v1648_v20, %v1648_v20  ;;  %v1650_v28 = vpop.eup %1649  ;;  %v573_v29 = vmul.f32 1.442695, %v556_v16  ;;  %v642_v20 = vunpack.c.3.s8 %v1984_v41  ;;  %vm764_vm11 = vcmp.ne.s32.totalorder %v1448_v7, %v2009_v10 }
  0xd3   : > { %1651 = vpow2.f32 %v589_v21  ;;  %v528_v26 = vmin.f32 %v430_v11, %v512_v13  ;;  %v507_v32 = vadd.f32 %v1977_v35, %v444_v22  ;;  %v611_v47 = vpack.c.bf16 %v1650_v28, %v1650_v28  ;;  %vm765_vm13 = vmpackc.low %vm764_vm11, %vm763_vm10 }
  0xd4   : > { %v2078_v33 = vpop.permute.xlu2 %487  ;;  %v884_v34 = vsel %vm856_vm1, %v616_v23, 0  ;;  %1653 = vpow2.f32 %v573_v29  ;;  %v727_v13 = vunpack.c.0.s8 %v700_v58  ;;  %v723_v23 = vunpack.c.1.s8 %v699_v44 }
  0xd5   : > { %v544_v39 = vpack.c.bf16 %v528_v26, %v528_v26  ;;  %v523_v43 = vmin.f32 %v2034_v42, %v507_v32  ;;  %v953_v46 = vunpack.c.l.b16 %v884_v34  ;;  %v879_v62 = vsel %vm821_vm5, %v611_v47, 0 }
  0xd6   : > { %v948_v16 = vunpack.c.l.b16 %v879_v62  ;;  %v1457_v27 = vunpack.i.l.s16 %v727_v13  ;;  %v1458_v28 = vunpack.i.l.s16 %v726_v9  ;;  %v645_v29 = vunpack.c.2.s8 %v1969_v30 }
  0xd7   : > { %v560_v50 = vunpack.c.l.bf16 %v544_v39  ;;  %v539_v51 = vpack.c.bf16 %v523_v43, %v523_v43  ;;  %v962_v53 = vpack.c.b16 %v953_v46, %v952_v45  ;;  %v521_v26 = vadd.f32 %v1977_v35, %v1994_v52 }
  0xd8   : > { %v439_v41 = vadd.f32 %v1980_v36, %v2042_v59  ;;  %v518_v32 = vadd.f32 %v1977_v35, %v2078_v33  ;;  %v669_v34 = vpack.c.b16 %v642_v20, %v642_v20  ;;  %v1455_v43 = vunpack.i.l.s16 %v724_v19  ;;  %v397_v62 = vpop.permute.xlu0 %396 }
  0xd9   : > { %v1652_v42 = vpop.eup %1651  ;;  %v555_v31 = vunpack.c.l.bf16 %v539_v51  ;;  %1058 = vmatmul.bf16.vlgmr.msra.gmra.mxu3 %v962_v53  ;;  %v581_v1 = vmul.f32 1.442695, %v560_v50  ;;  %v667_v45 = vpack.c.b16 %v641_v12, %v641_v12  ;;  %v1456_v47 = vunpack.i.l.s16 %v723_v23 }
  0xda   : > { %v460_v60 = vpop.permute.xlu1 %459  ;;  %v612_v61 = vpack.c.bf16 %v1652_v42, %v1652_v42  ;;  %v1654_v14 = vpop.eup %1653  ;;  %vm798_vm14 = vcmp.ne.s32.totalorder %v1457_v27, %v2002_v3  ;;  %vm799_vm15 = vcmp.ne.s32.totalorder %v1458_v28, %v2009_v10  ;;  %v675_v33 = vpack.c.b16 %v645_v29, %v645_v29 }
  0xdb   : > { %v571_v4 = vmul.f32 1.442695, %v555_v31  ;;  %v511_v6 = vadd.f32 %v1977_v35, %v460_v60  ;;  %v604_v22 = vpack.c.bf16 %v1654_v14, %v1654_v14  ;;  %v537_v49 = vmin.f32 %v439_v41, %v521_v26  ;;  %vm800_vm2 = vmpackc.low %vm799_vm15, %vm798_vm14 }
  0xdc   : > { %v880_v2 = vsel %vm828_vm7, %v612_v61, 0  ;;  %v670_v53 = vpack.c.b8 %v669_v34, %v669_v34  ;;  %v668_v42 = vpack.c.b8 %v667_v45, %v667_v45  ;;  %vm791_vm0 = vcmp.ne.s32.totalorder %v1455_v43, %v2002_v3 }
  0xdd   : > { %1655 = vpow2.f32 %v571_v4  ;;  %v527_v15 = vmin.f32 %v429_v57, %v511_v6  ;;  %v949_v17 = vunpack.c.l.b16 %v880_v2  ;;  %v2102_v18 = vpop.permute.xlu2 %356  ;;  %v872_v59 = vsel %vm2110_vm12, %v604_v22, 0 }
  0xde   : > { %1657 = vpow2.f32 %v581_v1  ;;  %v941_v56 = vunpack.c.l.b16 %v872_v59  ;;  %v646_v57 = vunpack.c.3.s8 %v1969_v30  ;;  %vm792_vm1 = vcmp.ne.s32.totalorder %v1456_v47, %v2009_v10 }
  0xdf   : > { %v543_v21 = vpack.c.bf16 %v527_v15, %v527_v15  ;;  %v960_v11 = vpack.c.b16 %v949_v17, %v948_v16  ;;  %v553_v61 = vpack.c.bf16 %v537_v49, %v537_v49  ;;  %vm690_vm3 = vnez %v670_v53  ;;  %vm793_vm4 = vmpackc.low %vm792_vm1, %vm791_vm0 }
  0xe0   : > { %v676_v0 = vpack.c.b8 %v675_v33, %v675_v33  ;;  %vm689_vm5 = vnez %v668_v42  ;;  %v677_v1 = vpack.c.b16 %v646_v57, %v646_v57  ;;  %v435_v2 = vadd.f32 %v1980_v36, %v397_v62  ;;  %v422_v41 = vpop.permute.xlu0 %421 }
  0xe1   : > { %v559_v24 = vunpack.c.l.bf16 %v543_v21  ;;  %1048 = vmatmul.bf16.vlgmr.msra.gmra.mxu2 %v960_v11  ;;  %v706_v13 = vsel %vm690_vm3, 16843009, %v1802_v8  ;;  %v569_v14 = vunpack.c.l.bf16 %v553_v61  ;;  %v705_v16 = vsel %vm689_vm5, 16843009, %v1802_v8 }
  0xe2   : > { %vm693_vm6 = vnez %v676_v0  ;;  %v678_v21 = vpack.c.b8 %v677_v1, %v677_v1  ;;  %v744_v11 = vunpack.c.1.s8 %v706_v13  ;;  %v745_v12 = vunpack.c.0.s8 %v706_v13 }
  0xe3   : > { %v1656_v37 = vpop.eup %1655  ;;  %v579_v38 = vmul.f32 1.442695, %v559_v24  ;;  %v402_v39 = vpop.permute.xlu1 %401  ;;  %v599_v24 = vmul.f32 1.442695, %v569_v14  ;;  %v741_v27 = vunpack.c.1.s8 %v705_v16  ;;  %v742_v28 = vunpack.c.0.s8 %v705_v16 }
  0xe4   : > { %v436_v46 = vadd.f32 %v1980_v36, %v402_v39  ;;  %v603_v52 = vpack.c.bf16 %v1656_v37, %v1656_v37  ;;  %v1658_v48 = vpop.eup %1657  ;;  %v709_v29 = vsel %vm693_vm6, 16843009, %v1802_v8  ;;  %vm694_vm7 = vnez %v678_v21 }
  0xe5   : > { %1659 = vpow2.f32 %v579_v38  ;;  %v2131_v55 = vpop.permute.xlu2 %376  ;;  %v608_v58 = vpack.c.bf16 %v1658_v48, %v1658_v48  ;;  %v1469_v34 = vunpack.i.l.s16 %v745_v12  ;;  %v1470_v37 = vunpack.i.l.s16 %v744_v11 }
  0xe6   : > { %v534_v50 = vmin.f32 %v436_v46, %v518_v32  ;;  %v871_v51 = vsel %vm765_vm13, %v603_v52, 0  ;;  %v440_v38 = vadd.f32 %v1980_v36, %v422_v41  ;;  %v754_v45 = vunpack.c.0.s8 %v709_v29 }
  0xe7   : > { %v940_v54 = vunpack.c.l.b16 %v871_v51  ;;  %v876_v44 = vsel %vm800_vm2, %v608_v58, 0  ;;  %v1467_v46 = vunpack.i.l.s16 %v742_v28  ;;  %v1468_v52 = vunpack.i.l.s16 %v741_v27 }
  0xe8   : > { %v550_v31 = vpack.c.bf16 %v534_v50, %v534_v50  ;;  %v945_v20 = vunpack.c.l.b16 %v876_v44  ;;  %v710_v59 = vsel %vm694_vm7, 16843009, %v1802_v8  ;;  %v753_v33 = vunpack.c.1.s8 %v709_v29  ;;  %v382_v44 = vpop.permute.xlu0 %381 }
  0xe9   : > { %v956_v60 = vpack.c.b16 %v941_v56, %v940_v54  ;;  %v634_v49 = vunpack.c.3.s8 %v2005_v5  ;;  %vm840_vm8 = vcmp.ne.s32.totalorder %v1469_v34, %v2002_v3  ;;  %vm841_vm9 = vcmp.ne.s32.totalorder %v1470_v37, %v2009_v10 }
  0xea   : > { %v566_v63 = vunpack.c.l.bf16 %v550_v31  ;;  %v633_v50 = vunpack.c.2.s8 %v2005_v5  ;;  %v757_v53 = vunpack.c.0.s8 %v710_v59  ;;  %v1475_v54 = vunpack.i.l.s16 %v754_v45  ;;  %vm2153_vm12 = vmpackc.low %vm841_vm9, %vm840_vm8 }
  0xeb   : > { %v1660_v30 = vpop.eup %1659  ;;  %1028 = vmatmul.bf16.vlgmr.msra.gmra.mxu0 %v956_v60  ;;  %vm833_vm10 = vcmp.ne.s32.totalorder %v1467_v46, %v2002_v3  ;;  %vm834_vm11 = vcmp.ne.s32.totalorder %v1468_v52, %v2009_v10  ;;  %v756_v42 = vunpack.c.1.s8 %v710_v59  ;;  %v1476_v58 = vunpack.i.l.s16 %v753_v33 }
  0xec   : > { %v484_v4 = vpop.permute.xlu1 %483  ;;  %v607_v6 = vpack.c.bf16 %v1660_v30, %v1660_v30  ;;  %v593_v7 = vmul.f32 1.442695, %v566_v63  ;;  %v653_v60 = vpack.c.b16 %v634_v49, %v634_v49  ;;  %v651_v63 = vpack.c.b16 %v633_v50, %v633_v50  ;;  %vm835_vm13 = vmpackc.low %vm834_vm11, %vm833_vm10 }
  0xed   : > { %v517_v9 = vadd.f32 %v1977_v35, %v484_v4  ;;  %vm861_vm14 = vcmp.ne.s32.totalorder %v1475_v54, %v2002_v3  ;;  %v1477_v4 = vunpack.i.l.s16 %v757_v53  ;;  %v1478_v13 = vunpack.i.l.s16 %v756_v42 }
  0xee   : > { %v875_v15 = vsel %vm793_vm4, %v607_v6, 0  ;;  %1661 = vpow2.f32 %v593_v7  ;;  %v456_v25 = vpop.permute.xlu2 %455  ;;  %v638_v6 = vunpack.c.3.s8 %v2030_v40  ;;  %vm862_vm15 = vcmp.ne.s32.totalorder %v1476_v58, %v2009_v10 }
  0xef   : > { %v533_v17 = vmin.f32 %v435_v2, %v517_v9  ;;  %v944_v19 = vunpack.c.l.b16 %v875_v15  ;;  %1663 = vpow2.f32 %v599_v24  ;;  %v510_v62 = vadd.f32 %v1977_v35, %v456_v25  ;;  %vm863_vm2 = vmpackc.low %vm862_vm15, %vm861_vm14 }
  0xf0   : > { %v654_v15 = vpack.c.b8 %v653_v60, %v653_v60  ;;  %v432_v21 = vadd.f32 %v1980_v36, %v382_v44  ;;  %vm868_vm0 = vcmp.ne.s32.totalorder %v1477_v4, %v2002_v3  ;;  %vm869_vm1 = vcmp.ne.s32.totalorder %v1478_v13, %v2009_v10 }
  0xf1   : > { %v549_v22 = vpack.c.bf16 %v533_v17, %v533_v17  ;;  %v958_v23 = vpack.c.b16 %v945_v20, %v944_v19  ;;  %v652_v20 = vpack.c.b8 %v651_v63, %v651_v63  ;;  %v637_v24 = vunpack.c.2.s8 %v2030_v40  ;;  %vm870_vm5 = vmpackc.low %vm869_vm1, %vm868_vm0 }
  0xf2   : > { %vm682_vm3 = vnez %v654_v15 }
  0xf3   : > { %v565_v26 = vunpack.c.l.bf16 %v549_v22  ;;  %1038 = vmatmul.bf16.vlgmr.msra.gmra.mxu1 %v958_v23  ;;  %v661_v22 = vpack.c.b16 %v638_v6, %v638_v6  ;;  %vm681_vm4 = vnez %v652_v20  ;;  %v698_v37 = vsel %vm682_vm3, 16843009, %v1802_v8 }
  0xf4   : > { %v504_v32 = vpop.permute.xlu1 %503  ;;  %v1662_v47 = vpop.eup %1661  ;;  %v697_v46 = vsel %vm681_vm4, 16843009, %v1802_v8  ;;  %v720_v49 = vunpack.c.1.s8 %v698_v37  ;;  %v721_v50 = vunpack.c.0.s8 %v698_v37  ;;  %v916_v37 = vld [vmem:[%s1908_s18 + $0x40] sm:$0xff] }
  0xf5   : > { %v591_v39 = vmul.f32 1.442695, %v565_v26  ;;  %v522_v43 = vadd.f32 %v1977_v35, %v504_v32  ;;  %v614_v56 = vpack.c.bf16 %v1662_v47, %v1662_v47  ;;  %v1664_v61 = vpop.eup %1663  ;;  %v427_v26 = vadd.f32 %v1980_v36, %v2102_v18 }
  0xf6   : > { %v472_v5 = vpop.permute.xlu2 %471  ;;  %v617_v19 = vpack.c.bf16 %v1664_v61, %v1664_v61  ;;  %v662_v41 = vpack.c.b8 %v661_v22, %v661_v22  ;;  %v718_v33 = vunpack.c.0.s8 %v697_v46  ;;  %v717_v42 = vunpack.c.1.s8 %v697_v46 }
  0xf7   : > { %1665 = vpow2.f32 %v591_v39  ;;  %v538_v48 = vmin.f32 %v440_v38, %v522_v43  ;;  %v882_v9 = vsel %vm2153_vm12, %v614_v56, 0  ;;  %v514_v14 = vadd.f32 %v1977_v35, %v472_v5 }
  0xf8   : > { %v951_v12 = vunpack.c.l.b16 %v882_v9  ;;  %v885_v40 = vsel %vm863_vm2, %v617_v19, 0  ;;  %v659_v38 = vpack.c.b16 %v637_v24, %v637_v24  ;;  %vm2178_vm6 = vnez %v662_v41 }
  0xf9   : > { %v554_v51 = vpack.c.bf16 %v538_v48, %v538_v48  ;;  %v530_v25 = vmin.f32 %v432_v21, %v514_v14  ;;  %v954_v47 = vunpack.c.l.b16 %v885_v40  ;;  %v1453_v60 = vunpack.i.l.s16 %v721_v50  ;;  %v912_v50 = vld [vmem:[%s1908_s18 + $0x20] sm:$0xff] }
  0xfa   : > { %v1454_v61 = vunpack.i.l.s16 %v720_v49  ;;  %v909_v49 = vld [vmem:[%s1908_s18 + $0x8] sm:$0xff] }
  0xfb   : > { %v570_v57 = vunpack.c.l.bf16 %v554_v51  ;;  %v546_v39 = vpack.c.bf16 %v530_v25, %v530_v25  ;;  %v660_v51 = vpack.c.b8 %v659_v38, %v659_v38  ;;  %vm784_vm8 = vcmp.ne.s32.totalorder %v1453_v60, %v2002_v3  ;;  %v921_v38 = vld [vmem:[%s1908_s18 + $0x68] sm:$0xff] }
  0xfc   : > { %vm785_vm9 = vcmp.ne.s32.totalorder %v1454_v61, %v2009_v10 }
  0xfd   : > { %v1666_v0 = vpop.eup %1665  ;;  %v601_v30 = vmul.f32 1.442695, %v570_v57  ;;  %v362_v1 = vpop.permute.xlu1 %361  ;;  %v562_v53 = vunpack.c.l.bf16 %v546_v39  ;;  %v431_v57 = vadd.f32 %v1980_v36, %v2131_v55  ;;  %vm685_vm7 = vnez %v660_v51  ;;  %vm786_vm12 = vmpackc.low %vm785_vm9, %vm784_vm8 }
  0xfe   : > { %v428_v2 = vadd.f32 %v1980_v36, %v362_v1  ;;  %v613_v7 = vpack.c.bf16 %v1666_v0, %v1666_v0  ;;  %v1452_v1 = vunpack.i.l.s16 %v717_v42  ;;  %v701_v36 = vsel %vm685_vm7, 16843009, %v1802_v8  ;;  %v913_v42 = vld [vmem:[%s1908_s18 + $0x28] sm:$0xff] }
  0xff   : > { %1667 = vpow2.f32 %v601_v30  ;;  %v585_v5 = vmul.f32 1.442695, %v562_v53  ;;  %v1451_v30 = vunpack.i.l.s16 %v718_v33  ;;  %v730_v9 = vunpack.c.0.s8 %v701_v36 }
 0x100   : > { %v526_v16 = vmin.f32 %v428_v2, %v510_v62  ;;  %v881_v17 = vsel %vm835_vm13, %v613_v7, 0  ;;  %v702_v62 = vsel %vm2178_vm6, 16843009, %v1802_v8  ;;  %vm778_vm11 = vcmp.ne.s32.totalorder %v1452_v1, %v2009_v10 }
 0x101   : > { %v950_v11 = vunpack.c.l.b16 %v881_v17  ;;  %v732_v55 = vunpack.c.1.s8 %v702_v62  ;;  %v733_v44 = vunpack.c.0.s8 %v702_v62  ;;  %vm777_vm10 = vcmp.ne.s32.totalorder %v1451_v30, %v2002_v3  ;;  %v919_v62 = vld [vmem:[%s1908_s18 + $0x58] sm:$0xff] }
 0x102   : > { %v542_v23 = vpack.c.bf16 %v526_v16, %v526_v16  ;;  %vm779_vm13 = vmpackc.low %vm778_vm11, %vm777_vm10  ;;  %v1459_v20 = vunpack.i.l.s16 %v730_v9 }
 0x103   : > { %v961_v27 = vpack.c.b16 %v951_v12, %v950_v11  ;;  %v1461_v14 = vunpack.i.l.s16 %v733_v44  ;;  %v1462_v15 = vunpack.i.l.s16 %v732_v55  ;;  %v910_v55 = vld [vmem:[%s1908_s18 + $0x10] sm:$0xff] }
 0x104   : > { %v558_v28 = vunpack.c.l.bf16 %v542_v23  ;;  %vm805_vm0 = vcmp.ne.s32.totalorder %v1459_v20, %v2002_v3 }
 0x105   : > { %v1668_v29 = vpop.eup %1667  ;;  %1053 = vmatmul.bf16.gmra.mxu2 %v961_v27  ;;  %vm812_vm14 = vcmp.ne.s32.totalorder %v1461_v14, %v2002_v3  ;;  %vm813_vm15 = vcmp.ne.s32.totalorder %v1462_v15, %v2009_v10  ;;  %v920_v3 = vld [vmem:[%s1908_s18 + $0x60] sm:$0xff] }
 0x106   : > { %v452_v32 = vpop.permute.xlu1 %451  ;;  %v618_v34 = vpack.c.bf16 %v1668_v29, %v1668_v29  ;;  %v577_v43 = vmul.f32 1.442695, %v558_v28  ;;  %vm814_vm2 = vmpackc.low %vm813_vm15, %vm812_vm14 }
 0x107   : > { %v509_v45 = vadd.f32 %v1977_v35, %v452_v32 }
 0x108   : > { %v886_v52 = vsel %vm870_vm5, %v618_v34, 0  ;;  %1669 = vpow2.f32 %v577_v43 }
 0x109   : > { %v525_v59 = vmin.f32 %v427_v26, %v509_v45  ;;  %v955_v48 = vunpack.c.l.b16 %v886_v52  ;;  %v908_v52 = vld [vmem:[%s1908_s18] sm:$0xff] }
 0x10b   : > { %v541_v54 = vpack.c.bf16 %v525_v59, %v525_v59  ;;  %v963_v56 = vpack.c.b16 %v955_v48, %v954_v47  ;;  %v917_v48 = vld [vmem:[%s1908_s18 + $0x48] sm:$0xff] }
 0x10d   : > { %v557_v31 = vunpack.c.l.bf16 %v541_v54  ;;  %1063 = vmatmul.bf16.gmra.mxu3 %v963_v56 }
 0x10e   : > { %v468_v58 = vpop.permute.xlu1 %467  ;;  %v1670_v4 = vpop.eup %1669 }
 0x10f   : > { %v575_v63 = vmul.f32 1.442695, %v557_v31  ;;  %v513_v0 = vadd.f32 %v1977_v35, %v468_v58  ;;  %v606_v7 = vpack.c.bf16 %v1670_v4, %v1670_v4  ;;  %v729_v35 = vunpack.c.1.s8 %v701_v36  ;;  %v918_v58 = vld [vmem:[%s1908_s18 + $0x50] sm:$0xff]  ;;  %v923_v4 = vld [vmem:[%s1908_s18 + $0x78] sm:$0xff] }
 0x111   : > { %1671 = vpow2.f32 %v575_v63  ;;  %v529_v6 = vmin.f32 %v431_v57, %v513_v0  ;;  %v874_v19 = vsel %vm786_vm12, %v606_v7, 0  ;;  %v1460_v21 = vunpack.i.l.s16 %v729_v35  ;;  %v911_v7 = vld [vmem:[%s1908_s18 + $0x18] sm:$0xff]  ;;  %v914_v35 = vld [vmem:[%s1908_s18 + $0x30] sm:$0xff] }
 0x112   : > { %1673 = vpow2.f32 %v585_v5  ;;  %v943_v23 = vunpack.c.l.b16 %v874_v19  ;;  %v922_v5 = vld [vmem:[%s1908_s18 + $0x70] sm:$0xff] }
 0x113   : > { %v545_v2 = vpack.c.bf16 %v529_v6, %v529_v6  ;;  %vm806_vm1 = vcmp.ne.s32.totalorder %v1460_v21, %v2009_v10 }
 0x114   : > { %vm807_vm3 = vmpackc.low %vm806_vm1, %vm805_vm0 }
 0x115   : > { %v561_v13 = vunpack.c.l.bf16 %v545_v2 }
 0x117   : > { %v1672_v8 = vpop.eup %1671  ;;  %v583_v16 = vmul.f32 1.442695, %v561_v13 }
 0x118   : > { %v605_v17 = vpack.c.bf16 %v1672_v8, %v1672_v8  ;;  %v1674_v11 = vpop.eup %1673  ;;  %v915_v8 = vld [vmem:[%s1908_s18 + $0x38] sm:$0xff] }
 0x119   : > { %1675 = vpow2.f32 %v583_v16  ;;  %v610_v24 = vpack.c.bf16 %v1674_v11, %v1674_v11 }
 0x11a   : > { %v873_v12 = vsel %vm779_vm13, %v605_v17, 0 }
 0x11b   : > { %v942_v22 = vunpack.c.l.b16 %v873_v12  ;;  %v878_v29 = vsel %vm814_vm2, %v610_v24, 0 }
 0x11c   : > { %v947_v32 = vunpack.c.l.b16 %v878_v29 }
 0x11d   : > { %v957_v25 = vpack.c.b16 %v943_v23, %v942_v22 }
 0x11f   : > { %v1676_v27 = vpop.eup %1675  ;;  %1033 = vmatmul.bf16.gmra.mxu0 %v957_v25 }
 0x120   : > { %v609_v28 = vpack.c.bf16 %v1676_v27, %v1676_v27 }
 0x122   : > { %v877_v26 = vsel %vm807_vm3, %v609_v28, 0 }
 0x123   : > { %v946_v41 = vunpack.c.l.b16 %v877_v26 }
 0x125   : > { %v959_v34 = vpack.c.b16 %v947_v32, %v946_v41 }
 0x127   : > { %1043 = vmatmul.bf16.gmra.mxu1 %v959_v34 }
 0x15c   : > { %v1059_v10 = vpop.f32.mrf.mxu3 }
 0x15d   : > { %v1081_v40 = vadd.f32 %v1059_v10, %v920_v3 }
 0x15f   : > { %1097 = vst [vmem:[%s1908_s18 + $0x60] sm:$0xff] %v1081_v40 }
 0x164   : > { %v1049_v39 = vpop.f32.mrf.mxu2  ;;  %v1061_v43 = vpop.f32.mrf.mxu3 }
 0x165   : > { %v1077_v45 = vadd.f32 %v1049_v39, %v916_v37  ;;  %v1082_v46 = vadd.f32 %v1061_v43, %v921_v38 }
 0x167   : > { %1093 = vst [vmem:[%s1908_s18 + $0x40] sm:$0xff] %v1077_v45 }
 0x168   : > { %1098 = vst [vmem:[%s1908_s18 + $0x68] sm:$0xff] %v1082_v46  ;;  %v1029_v59 = vpop.f32.mrf.mxu0 }
 0x169   : > { %v1069_v47 = vadd.f32 %v1029_v59, %v908_v52 }
 0x16b   : > { %1085 = vst [vmem:[%s1908_s18] sm:$0xff] %v1069_v47 }
 0x16c   : > { %v1051_v18 = vpop.f32.mrf.mxu2 }
 0x16d   : > { %v1078_v33 = vadd.f32 %v1051_v18, %v917_v48 }
 0x16f   : > { %1094 = vst [vmem:[%s1908_s18 + $0x48] sm:$0xff] %v1078_v33 }
 0x170   : > { %v1031_v51 = vpop.f32.mrf.mxu0  ;;  %v1039_v53 = vpop.f32.mrf.mxu1 }
 0x171   : > { %v1070_v54 = vadd.f32 %v1031_v51, %v909_v49  ;;  %v1073_v56 = vadd.f32 %v1039_v53, %v912_v50 }
 0x173   : > { %1086 = vst [vmem:[%s1908_s18 + $0x8] sm:$0xff] %v1070_v54 }
 0x174   : > { %1089 = vst [vmem:[%s1908_s18 + $0x20] sm:$0xff] %v1073_v56 }
 0x178   : > { %v1041_v57 = vpop.f32.mrf.mxu1 }
 0x179   : > { %v1074_v31 = vadd.f32 %v1041_v57, %v913_v42 }
 0x17b   : > { %1090 = vst [vmem:[%s1908_s18 + $0x28] sm:$0xff] %v1074_v31 }
 0x188   : > { %v1054_v60 = vpop.f32.mrf.mxu2 }
 0x189   : > { %v1079_v61 = vadd.f32 %v1054_v60, %v918_v58 }
 0x18b   : > { %1095 = vst [vmem:[%s1908_s18 + $0x50] sm:$0xff] %v1079_v61 }
 0x190   : > { %v1056_v63 = vpop.f32.mrf.mxu2  ;;  %v1064_v0 = vpop.f32.mrf.mxu3 }
 0x191   : > { %v1080_v30 = vadd.f32 %v1056_v63, %v919_v62  ;;  %v1083_v1 = vadd.f32 %v1064_v0, %v922_v5 }
 0x193   : > { %1096 = vst [vmem:[%s1908_s18 + $0x58] sm:$0xff] %v1080_v30 }
 0x194   : > { %1099 = vst [vmem:[%s1908_s18 + $0x70] sm:$0xff] %v1083_v1 }
 0x198   : > { %v1066_v6 = vpop.f32.mrf.mxu3 }
 0x199   : > { %v1084_v36 = vadd.f32 %v1066_v6, %v923_v4 }
 0x19b   : > { %1100 = vst [vmem:[%s1908_s18 + $0x78] sm:$0xff] %v1084_v36 }
 0x19c   : > { %v1034_v44 = vpop.f32.mrf.mxu0 }
 0x19d   : > { %v1071_v2 = vadd.f32 %v1034_v44, %v910_v55 }
 0x19f   : > { %1087 = vst [vmem:[%s1908_s18 + $0x10] sm:$0xff] %v1071_v2 }
 0x1a4   : > { %v1036_v9 = vpop.f32.mrf.mxu0  ;;  %v1044_v13 = vpop.f32.mrf.mxu1 }
 0x1a5   : > { %v1072_v14 = vadd.f32 %v1036_v9, %v911_v7  ;;  %v1075_v15 = vadd.f32 %v1044_v13, %v914_v35 }
 0x1a7   : > { %1088 = vst [vmem:[%s1908_s18 + $0x18] sm:$0xff] %v1072_v14 }
 0x1a8   : > { %1091 = vst [vmem:[%s1908_s18 + $0x30] sm:$0xff] %v1075_v15 }
 0x1ab   : > { %1104 = sbr.rel (%p1513_p13) target bundleno = 612 (0x264), region = 82 }
 0x1ac   : > { %v1046_v16 = vpop.f32.mrf.mxu1 }
 0x1ad   : > { %v1076_v17 = vadd.f32 %v1046_v16, %v915_v8 }
 0x1af   : > { %1092 = vst [vmem:[%s1908_s18 + $0x38] sm:$0xff] %v1076_v17 }
 0x1b0   : > { %v2231_v19 = vld [vmem:[%s1908_s18 + $0x20] sm:$0xff]  ;;  %v2234_v20 = vld [vmem:[%s1908_s18 + $0x10] sm:$0xff]  ;;  %v1803_v11 = vmov 16   ;;  %v2243_v12 = vld [vmem:[%s1908_s18 + $0x28] sm:$0xff] }
 0x1b1   : > { %v2237_v21 = vld [vmem:[%s1908_s18] sm:$0xff]  ;;  %1679 = vset.pattern.permute.xlu2 %v1803_v11  ;;  %1678 = vset.pattern.permute.xlu1 %v1803_v11  ;;  %1680 = vrcp.f32 %v2231_v19  ;;  %v2246_v22 = vld [vmem:[%s1908_s18 + $0x18] sm:$0xff]  ;;  %v2249_v23 = vld [vmem:[%s1908_s18 + $0x8] sm:$0xff] }
 0x1b2   : > { %1677 = vset.pattern.permute.xlu0 %v1803_v11  ;;  %1682 = vrcp.f32 %v2234_v20  ;;  %v1113_v28 = vld [vmem:[%s1908_s18 + $0x40] sm:$0xff]  ;;  %v2259_v32 = vld [vmem:[%s1908_s18 + $0x30] sm:$0xff]  ;;  %v1116_v3 = vld [vmem:[%s1908_s18 + $0x58] sm:$0xff] }
 0x1b3   : > { %1684 = vrcp.f32 %v2237_v21  ;;  %v2265_v40 = vld [vmem:[%s1908_s18 + $0x50] sm:$0xff]  ;;  %v2268_v38 = vld [vmem:[%s1908_s18 + $0x48] sm:$0xff]  ;;  %v2277_v59 = vld [vmem:[%s1908_s18 + $0x60] sm:$0xff] }
 0x1b4   : > { %1686 = vrcp.f32 %v2243_v12  ;;  %v1119_v43 = vld [vmem:[%s1908_s18 + $0x70] sm:$0xff]  ;;  %v2274_v46 = vld [vmem:[%s1908_s18 + $0x68] sm:$0xff]  ;;  %v2282_v33 = vld [vmem:[%s1908_s18 + $0x78] sm:$0xff] }
 0x1b5   : > { %1688 = vrcp.f32 %v2246_v22 }
 0x1b6   : > { %1690 = vrcp.f32 %v2249_v23  ;;  %v2256_v26 = vld [vmem:[%s1908_s18 + $0x38] sm:$0xff] }
 0x1b7   : > { %v1681_v24 = vpop.eup %1680  ;;  %1692 = vrcp.f32 %v1113_v28 }
 0x1b8   : > { %v1683_v25 = vpop.eup %1682  ;;  %1159 = vperm.xlu2 %1679, %v1681_v24   ;;  %1694 = vrcp.f32 %v2256_v26 }
 0x1b9   : > { %v1685_v27 = vpop.eup %1684  ;;  %1149 = vperm.xlu1 %1678, %v1683_v25   ;;  %1696 = vrcp.f32 %v2259_v32 }
 0x1ba   : > { %1139 = vperm.xlu0 %1677, %v1685_v27   ;;  %v1687_v29 = vpop.eup %1686  ;;  %1698 = vrcp.f32 %v1116_v3 }
 0x1bb   : > { %v1689_v41 = vpop.eup %1688  ;;  %1700 = vrcp.f32 %v2265_v40 }
 0x1bc   : > { %v1691_v34 = vpop.eup %1690  ;;  %1702 = vrcp.f32 %v2268_v38 }
 0x1bd   : > { %v1693_v10 = vpop.eup %1692  ;;  %1704 = vrcp.f32 %v1119_v43 }
 0x1be   : > { %v1695_v37 = vpop.eup %1694  ;;  %1706 = vrcp.f32 %v2274_v46 }
 0x1bf   : > { %v1697_v39 = vpop.eup %1696  ;;  %1708 = vrcp.f32 %v2277_v59 }
 0x1c0   : > { %1164 = vperm.xlu2 %1679, %v1687_v29   ;;  %v1699_v45 = vpop.eup %1698  ;;  %1710 = vrcp.f32 %v2282_v33 }
 0x1c1   : > { %1154 = vperm.xlu1 %1678, %v1689_v41   ;;  %v1701_v52 = vpop.eup %1700 }
 0x1c2   : > { %1144 = vperm.xlu0 %1677, %v1691_v34   ;;  %v1703_v47 = vpop.eup %1702 }
 0x1c3   : > { %v1705_v48 = vpop.eup %1704 }
 0x1c4   : > { %v1707_v18 = vpop.eup %1706 }
 0x1c5   : > { %v1709_v49 = vpop.eup %1708 }
 0x1c6   : > { %v1711_v50 = vpop.eup %1710 }
 0x1c8   : > { %1179 = vperm.xlu2 %1679, %v1693_v10  }
 0x1c9   : > { %1174 = vperm.xlu1 %1678, %v1695_v37  }
 0x1ca   : > { %1169 = vperm.xlu0 %1677, %v1697_v39  }
 0x1d0   : > { %1194 = vperm.xlu2 %1679, %v1699_v45  }
 0x1d1   : > { %1189 = vperm.xlu1 %1678, %v1701_v52  }
 0x1d2   : > { %1184 = vperm.xlu0 %1677, %v1703_v47  }
 0x1d8   : > { %1209 = vperm.xlu2 %1679, %v1705_v48  }
 0x1d9   : > { %1204 = vperm.xlu1 %1678, %v1707_v18  }
 0x1da   : > { %1199 = vperm.xlu0 %1677, %v1709_v49  }
 0x1e2   : > { %1214 = vperm.xlu0 %1677, %v1711_v50  }
 0x212   : > { %v1160_v51 = vpop.permute.xlu2 %1159 }
 0x213   : > { %v1221_v53 = vmul.f32 %v1160_v51, %v2231_v19 }
 0x215   : > { %v1257_v54 = vmul.f32 1.442695, %v1221_v53  ;;  %vm1237_vm4 = vcmp.gt.f32.partialorder %v1221_v53, 0.0 }
 0x217   : > { %1712 = vpow2.f32 %v1257_v54 }
 0x21a   : > { %v1165_v56 = vpop.permute.xlu2 %1164 }
 0x21b   : > { %v1222_v42 = vmul.f32 %v1165_v56, %v2243_v12 }
 0x21d   : > { %v1713_v57 = vpop.eup %1712  ;;  %v1259_v31 = vmul.f32 1.442695, %v1222_v42  ;;  %vm1238_vm5 = vcmp.gt.f32.partialorder %v1222_v42, 0.0 }
 0x21e   : > { %v1518_v58 = vadd.f32 -1.0, %v1713_v57 }
 0x21f   : > { %1714 = vpow2.f32 %v1259_v31 }
 0x220   : > { %v1301_v60 = vsel %vm1237_vm4, %v1221_v53, %v1518_v58 }
 0x221   : > { %1317 = vst [vmem:[%s1908_s18 + $0x20] sm:$0xff] %v1301_v60 }
 0x222   : > { %v1180_v61 = vpop.permute.xlu2 %1179 }
 0x223   : > { %v1225_v62 = vmul.f32 %v1180_v61, %v1113_v28 }
 0x225   : > { %v1715_v5 = vpop.eup %1714  ;;  %v1265_v63 = vmul.f32 1.442695, %v1225_v62  ;;  %vm1241_vm6 = vcmp.gt.f32.partialorder %v1225_v62, 0.0 }
 0x226   : > { %v1519_v0 = vadd.f32 -1.0, %v1715_v5 }
 0x227   : > { %1716 = vpow2.f32 %v1265_v63 }
 0x228   : > { %v1302_v30 = vsel %vm1238_vm5, %v1222_v42, %v1519_v0 }
 0x229   : > { %1318 = vst [vmem:[%s1908_s18 + $0x28] sm:$0xff] %v1302_v30 }
 0x22a   : > { %v1195_v1 = vpop.permute.xlu2 %1194 }
 0x22b   : > { %v1228_v4 = vmul.f32 %v1195_v1, %v1116_v3  ;;  %v1150_v6 = vpop.permute.xlu1 %1149 }
 0x22c   : > { %v1219_v36 = vmul.f32 %v1150_v6, %v2234_v20  ;;  %v1140_v55 = vpop.permute.xlu0 %1139 }
 0x22d   : > { %v1717_v44 = vpop.eup %1716  ;;  %v1271_v2 = vmul.f32 1.442695, %v1228_v4  ;;  %v1217_v7 = vmul.f32 %v1140_v55, %v2237_v21  ;;  %vm1244_vm7 = vcmp.gt.f32.partialorder %v1228_v4, 0.0 }
 0x22e   : > { %v1522_v35 = vadd.f32 -1.0, %v1717_v44  ;;  %v1253_v9 = vmul.f32 1.442695, %v1219_v36  ;;  %vm1235_vm8 = vcmp.gt.f32.partialorder %v1219_v36, 0.0 }
 0x22f   : > { %1718 = vpow2.f32 %v1271_v2  ;;  %v1249_v13 = vmul.f32 1.442695, %v1217_v7  ;;  %vm1233_vm9 = vcmp.gt.f32.partialorder %v1217_v7, 0.0 }
 0x230   : > { %v1305_v14 = vsel %vm1241_vm6, %v1225_v62, %v1522_v35  ;;  %1720 = vpow2.f32 %v1253_v9 }
 0x231   : > { %1321 = vst [vmem:[%s1908_s18 + $0x40] sm:$0xff] %v1305_v14  ;;  %1722 = vpow2.f32 %v1249_v13 }
 0x232   : > { %v1210_v15 = vpop.permute.xlu2 %1209 }
 0x233   : > { %v1231_v8 = vmul.f32 %v1210_v15, %v1119_v43  ;;  %v1155_v16 = vpop.permute.xlu1 %1154 }
 0x234   : > { %v1220_v17 = vmul.f32 %v1155_v16, %v2246_v22  ;;  %v1145_v19 = vpop.permute.xlu0 %1144 }
 0x235   : > { %v1719_v20 = vpop.eup %1718  ;;  %v1277_v11 = vmul.f32 1.442695, %v1231_v8  ;;  %v1218_v12 = vmul.f32 %v1145_v19, %v2249_v23  ;;  %vm1247_vm10 = vcmp.gt.f32.partialorder %v1231_v8, 0.0 }
 0x236   : > { %v1721_v21 = vpop.eup %1720  ;;  %v1525_v24 = vadd.f32 -1.0, %v1719_v20  ;;  %v1255_v25 = vmul.f32 1.442695, %v1220_v17  ;;  %vm1236_vm11 = vcmp.gt.f32.partialorder %v1220_v17, 0.0 }
 0x237   : > { %v1723_v27 = vpop.eup %1722  ;;  %v1516_v28 = vadd.f32 -1.0, %v1721_v21  ;;  %1724 = vpow2.f32 %v1277_v11  ;;  %v1251_v29 = vmul.f32 1.442695, %v1218_v12  ;;  %vm1234_vm12 = vcmp.gt.f32.partialorder %v1218_v12, 0.0 }
 0x238   : > { %v1308_v41 = vsel %vm1244_vm7, %v1228_v4, %v1525_v24  ;;  %v1514_v34 = vadd.f32 -1.0, %v1723_v27  ;;  %1726 = vpow2.f32 %v1255_v25 }
 0x239   : > { %1324 = vst [vmem:[%s1908_s18 + $0x58] sm:$0xff] %v1308_v41  ;;  %v1299_v22 = vsel %vm1235_vm8, %v1219_v36, %v1516_v28  ;;  %1728 = vpow2.f32 %v1251_v29 }
 0x23a   : > { %1315 = vst [vmem:[%s1908_s18 + $0x10] sm:$0xff] %v1299_v22  ;;  %v1297_v23 = vsel %vm1233_vm9, %v1217_v7, %v1514_v34 }
 0x23b   : > { %1313 = vst [vmem:[%s1908_s18] sm:$0xff] %v1297_v23  ;;  %v1175_v3 = vpop.permute.xlu1 %1174 }
 0x23c   : > { %v1224_v10 = vmul.f32 %v1175_v3, %v2256_v26  ;;  %v1170_v37 = vpop.permute.xlu0 %1169 }
 0x23d   : > { %v1725_v39 = vpop.eup %1724  ;;  %v1223_v43 = vmul.f32 %v1170_v37, %v2259_v32 }
 0x23e   : > { %v1727_v45 = vpop.eup %1726  ;;  %v1528_v52 = vadd.f32 -1.0, %v1725_v39  ;;  %v1263_v47 = vmul.f32 1.442695, %v1224_v10  ;;  %vm1240_vm13 = vcmp.gt.f32.partialorder %v1224_v10, 0.0 }
 0x23f   : > { %v1729_v48 = vpop.eup %1728  ;;  %v1517_v18 = vadd.f32 -1.0, %v1727_v45  ;;  %v1261_v49 = vmul.f32 1.442695, %v1223_v43  ;;  %vm1239_vm14 = vcmp.gt.f32.partialorder %v1223_v43, 0.0 }
 0x240   : > { %v1311_v50 = vsel %vm1247_vm10, %v1231_v8, %v1528_v52  ;;  %v1515_v51 = vadd.f32 -1.0, %v1729_v48  ;;  %1730 = vpow2.f32 %v1263_v47 }
 0x241   : > { %1327 = vst [vmem:[%s1908_s18 + $0x70] sm:$0xff] %v1311_v50  ;;  %v1300_v53 = vsel %vm1236_vm11, %v1220_v17, %v1517_v18  ;;  %1732 = vpow2.f32 %v1261_v49 }
 0x242   : > { %1316 = vst [vmem:[%s1908_s18 + $0x18] sm:$0xff] %v1300_v53  ;;  %v1298_v26 = vsel %vm1234_vm12, %v1218_v12, %v1515_v51 }
 0x243   : > { %1314 = vst [vmem:[%s1908_s18 + $0x8] sm:$0xff] %v1298_v26  ;;  %v1190_v32 = vpop.permute.xlu1 %1189 }
 0x244   : > { %v1227_v54 = vmul.f32 %v1190_v32, %v2265_v40  ;;  %v1185_v56 = vpop.permute.xlu0 %1184 }
 0x245   : > { %v1226_v42 = vmul.f32 %v1185_v56, %v2268_v38 }
 0x246   : > { %v1731_v57 = vpop.eup %1730  ;;  %v1269_v31 = vmul.f32 1.442695, %v1227_v54  ;;  %vm1243_vm15 = vcmp.gt.f32.partialorder %v1227_v54, 0.0 }
 0x247   : > { %v1733_v58 = vpop.eup %1732  ;;  %v1521_v60 = vadd.f32 -1.0, %v1731_v57  ;;  %v1267_v61 = vmul.f32 1.442695, %v1226_v42  ;;  %vm1242_vm0 = vcmp.gt.f32.partialorder %v1226_v42, 0.0 }
 0x248   : > { %v1520_v62 = vadd.f32 -1.0, %v1733_v58  ;;  %1734 = vpow2.f32 %v1269_v31 }
 0x249   : > { %v1304_v5 = vsel %vm1240_vm13, %v1224_v10, %v1521_v60  ;;  %1736 = vpow2.f32 %v1267_v61 }
 0x24a   : > { %1320 = vst [vmem:[%s1908_s18 + $0x38] sm:$0xff] %v1304_v5  ;;  %v1303_v63 = vsel %vm1239_vm14, %v1223_v43, %v1520_v62 }
 0x24b   : > { %1319 = vst [vmem:[%s1908_s18 + $0x30] sm:$0xff] %v1303_v63  ;;  %v1205_v40 = vpop.permute.xlu1 %1204 }
 0x24c   : > { %v1230_v0 = vmul.f32 %v1205_v40, %v2274_v46  ;;  %v1200_v38 = vpop.permute.xlu0 %1199 }
 0x24d   : > { %v1229_v30 = vmul.f32 %v1200_v38, %v2277_v59 }
 0x24e   : > { %v1735_v1 = vpop.eup %1734  ;;  %v1275_v4 = vmul.f32 1.442695, %v1230_v0  ;;  %vm1246_vm1 = vcmp.gt.f32.partialorder %v1230_v0, 0.0 }
 0x24f   : > { %v1737_v6 = vpop.eup %1736  ;;  %v1524_v36 = vadd.f32 -1.0, %v1735_v1  ;;  %v1273_v55 = vmul.f32 1.442695, %v1229_v30  ;;  %vm1245_vm2 = vcmp.gt.f32.partialorder %v1229_v30, 0.0 }
 0x250   : > { %v1523_v44 = vadd.f32 -1.0, %v1737_v6  ;;  %1738 = vpow2.f32 %v1275_v4 }
 0x251   : > { %v1307_v2 = vsel %vm1243_vm15, %v1227_v54, %v1524_v36  ;;  %1740 = vpow2.f32 %v1273_v55 }
 0x252   : > { %1323 = vst [vmem:[%s1908_s18 + $0x50] sm:$0xff] %v1307_v2  ;;  %v1306_v7 = vsel %vm1242_vm0, %v1226_v42, %v1523_v44 }
 0x253   : > { %1322 = vst [vmem:[%s1908_s18 + $0x48] sm:$0xff] %v1306_v7 }
 0x254   : > { %v1215_v46 = vpop.permute.xlu0 %1214 }
 0x255   : > { %v1232_v35 = vmul.f32 %v1215_v46, %v2282_v33 }
 0x256   : > { %v1739_v59 = vpop.eup %1738 }
 0x257   : > { %v1741_v9 = vpop.eup %1740  ;;  %v1527_v13 = vadd.f32 -1.0, %v1739_v59  ;;  %v1279_v14 = vmul.f32 1.442695, %v1232_v35  ;;  %vm1248_vm3 = vcmp.gt.f32.partialorder %v1232_v35, 0.0 }
 0x258   : > { %v1526_v15 = vadd.f32 -1.0, %v1741_v9 }
 0x259   : > { %v1310_v8 = vsel %vm1246_vm1, %v1230_v0, %v1527_v13  ;;  %1742 = vpow2.f32 %v1279_v14 }
 0x25a   : > { %1326 = vst [vmem:[%s1908_s18 + $0x68] sm:$0xff] %v1310_v8  ;;  %v1309_v16 = vsel %vm1245_vm2, %v1229_v30, %v1526_v15 }
 0x25b   : > { %1325 = vst [vmem:[%s1908_s18 + $0x60] sm:$0xff] %v1309_v16 }
 0x25f   : > { %v1743_v17 = vpop.eup %1742 }
 0x260   : > { %v1529_v19 = vadd.f32 -1.0, %v1743_v17 }
 0x262   : > { %v1312_v20 = vsel %vm1248_vm3, %v1232_v35, %v1529_v19 }
 0x263   : > { %1328 = vst [vmem:[%s1908_s18 + $0x78] sm:$0xff] %v1312_v20 }
 0x264 PF: > { %s14_s21 = sadd.s32 1, %s1798_s21   ;;  %s2352_s15 = smov %s1778_s16 }
 0x265   : > { %p11_p0 = scmp.ge.s32.totalorder %s14_s21, 11   ;;  %s2353_s16 = smov %s1880_s28 }
 0x266   : > { %s2354_s17 = smov %s1790_s19  ;;  %s2355_s18 = smov %s1794_s20 }
 0x267   : > { %s2356_s19 = smov %s2359_s22  ;;  %s2357_s20 = smov %s2363_s23 }
 0x268   :  { %13 = sbr.rel (!%p11_p0) target bundleno = 4 (0x4), region = 124 }

</bundles_post_ra>
